<compile_context>
chip_gen: v7x
topology: tpu7x:2x2x1
jax: 0.10.0
libtpu: 0.0.40
codegen_flags: <defaults>
</compile_context>

<pallas_src>
import functools

import jax
import jax.numpy as jnp
from jax.experimental import pallas as pl
from jax.experimental.pallas import tpu as pltpu


def _round_up(n, m):
    return ((n + m - 1) // m) * m


def dar_kernel(x_ref, w1_ref, b1_ref, w2_ref, b2_ref, w3_ref, b3_ref, out_ref):
    """Fused 3-layer MLP (BN folded into weights): matmul+bias+ReLU x2 -> row reduce."""
    x = x_ref[...]                                                    # (TB, d_in)

    # layer_1: Linear (BN folded) -> ReLU   (Dropout = identity in eval mode)
    h = jnp.dot(x, w1_ref[...], preferred_element_type=jnp.float32) + b1_ref[...]
    h = jnp.maximum(h, 0.0)

    # mid layer: Linear (BN folded) -> ReLU
    h = jnp.dot(h, w2_ref[...], preferred_element_type=jnp.float32) + b2_ref[...]
    h = jnp.maximum(h, 0.0)

    # layer_out: Linear(H -> 1) as a VPU multiply + lane reduction (no N=1 MXU op).
    out_ref[...] = jnp.sum(h * w3_ref[...], axis=-1, keepdims=True) + b3_ref[0]


def fold_dar_params(params):
    """Fold eval-mode BatchNorm1d (running stats) into the Linear weights/biases.

    Called ONCE; the folded params are what dar_forward consumes every call.
      y = ((x@w + b) - m) / sqrt(v+eps) * g + be  ==  x @ (w*s) + (b*s + be - m*s)
    """
    (w1, b1, g1, be1, m1, v1,
     w2, b2, g2, be2, m2, v2,
     w3, b3) = params
    eps = 1e-5

    s1 = g1 / jnp.sqrt(v1 + eps)
    t1 = be1 - m1 * s1
    s2 = g2 / jnp.sqrt(v2 + eps)
    t2 = be2 - m2 * s2

    w1f = (w1.astype(jnp.float32) * s1[None, :]).astype(jnp.float32)  # (d_in, H)
    b1f = (b1 * s1 + t1).reshape(1, -1).astype(jnp.float32)           # (1, H)
    w2f = (w2.astype(jnp.float32) * s2[None, :]).astype(jnp.float32)  # (H, H)
    b2f = (b2 * s2 + t2).reshape(1, -1).astype(jnp.float32)           # (1, H)
    w3f = w3.reshape(1, -1).astype(jnp.float32)                       # (1, H) row
    b3f = b3.reshape(1).astype(jnp.float32)                           # (1,)  SMEM scalar
    return (w1f, b1f, w2f, b2f, w3f, b3f)


@jax.jit
def dar_forward(x, folded_params):
    """x: (batch, ar, 3) float32 -> (batch, 1) float32. folded_params from fold_dar_params."""
    B = x.shape[0]
    x2d = x.reshape(B, -1).astype(jnp.float32)                        # (B, ar*3)
    d_in = x2d.shape[1]

    w1f, b1f, w2f, b2f, w3f, b3f = folded_params
    H = w1f.shape[1]

    # --- Batch tiling ------------------------------------------------------
    # Large tiles amortize per-grid-step overhead; always aim for >= 2 grid steps
    # (when the batch allows) so both TensorCores are used on megacore parts.
    # No jnp.pad: Pallas partial last blocks handle a ragged batch, and the output
    # writeback is clipped to the true array bounds.
    TB_MAX = 8192
    B8 = _round_up(B, 8)
    if B8 <= TB_MAX:
        TB = max(8, _round_up(pl.cdiv(B8, 2), 8))   # split into ~2 tiles
    else:
        TB = TB_MAX
    grid = (pl.cdiv(B, TB),)

    const = lambda shape: pl.BlockSpec(shape, lambda i: (0, 0))       # weights stay resident

    out = pl.pallas_call(
        dar_kernel,
        out_shape=jax.ShapeDtypeStruct((B, 1), jnp.float32),
        grid=grid,
        in_specs=[
            pl.BlockSpec((TB, d_in), lambda i: (i, 0)),               # x tile (streamed)
            const((d_in, H)),                                         # w1 (BN folded)
            const((1, H)),                                            # b1 (BN folded)
            const((H, H)),                                            # w2 (BN folded)
            const((1, H)),                                            # b2 (BN folded)
            const((1, H)),                                            # w3 as a row
            pl.BlockSpec(memory_space=pltpu.MemorySpace.SMEM),        # b3 scalar
        ],
        out_specs=pl.BlockSpec((TB, 1), lambda i: (i, 0)),
        compiler_params=pltpu.CompilerParams(
            dimension_semantics=("parallel",),
            # Large double-buffered lane-padded tiles (x and the (TB,1) output both pad
            # to 128 lanes in VMEM) + (TB,H) intermediates: raise the scoped VMEM limit
            # above v5e's 16 MiB default, stay well under v7x's 64 MiB physical per TC.
            vmem_limit_bytes=48 * 1024 * 1024),
    )(x2d, w1f, b1f, w2f, b2f, w3f, b3f)

    return out


def make_params(key, ar, d_hidden):
    """Deterministic synthetic parameters matching DAR(ar, num_layers=3, d_hidden)."""
    d_in = ar * 3
    ks = jax.random.split(key, 8)
    w1 = jax.random.normal(ks[0], (d_in, d_hidden), jnp.float32) * 0.1
    b1 = jax.random.normal(ks[1], (d_hidden,), jnp.float32) * 0.1
    g1 = jnp.ones((d_hidden,), jnp.float32) * 1.1        # BN weight
    be1 = jnp.ones((d_hidden,), jnp.float32) * 0.05      # BN bias
    m1 = jnp.ones((d_hidden,), jnp.float32) * 0.02       # running mean
    v1 = jnp.ones((d_hidden,), jnp.float32) * 0.9        # running var

    w2 = jax.random.normal(ks[2], (d_hidden, d_hidden), jnp.float32) * 0.1
    b2 = jax.random.normal(ks[3], (d_hidden,), jnp.float32) * 0.1
    g2 = jnp.ones((d_hidden,), jnp.float32) * 0.95
    be2 = jnp.ones((d_hidden,), jnp.float32) * -0.03
    m2 = jnp.ones((d_hidden,), jnp.float32) * 0.01
    v2 = jnp.ones((d_hidden,), jnp.float32) * 1.05

    w3 = jax.random.normal(ks[4], (d_hidden, 1), jnp.float32) * 0.1
    b3 = jax.random.normal(ks[5], (1,), jnp.float32) * 0.1
    return (w1, b1, g1, be1, m1, v1,
            w2, b2, g2, be2, m2, v2,
            w3, b3)


def dar_reference(x, params):
    """Pure-JAX reference of the same eval-mode forward."""
    (w1, b1, g1, be1, m1, v1,
     w2, b2, g2, be2, m2, v2,
     w3, b3) = params
    eps = 1e-5
    h = x.reshape(x.shape[0], -1)
    h = h @ w1 + b1
    h = (h - m1) / jnp.sqrt(v1 + eps) * g1 + be1
    h = jnp.maximum(h, 0.0)
    h = h @ w2 + b2
    h = (h - m2) / jnp.sqrt(v2 + eps) * g2 + be2
    h = jnp.maximum(h, 0.0)
    return h @ w3 + b3


if __name__ == "__main__":
    # TODO(synk): Dropout / training-mode BatchNorm (batch statistics) are stochastic /
    # training-only; eval-mode semantics are implemented instead.
    ar = 8
    d_hidden = 32

    key = jax.random.PRNGKey(0)
    kx, kp = jax.random.split(key)
    params = make_params(kp, ar, d_hidden)
    folded = fold_dar_params(params)           # BN fold done once, outside the call path

    # batch=10 (not a multiple of 8): exercises the ragged last block with grid=(2,)
    # batch=300: exercises the "split into 2 big tiles" path with a partial last block
    for batch in (10, 300):
        x = jax.random.normal(kx, (batch, ar, 3), jnp.float32)

        out = dar_forward(x, folded)
        out = jax.block_until_ready(out)

        ref = dar_reference(x, params)
        assert out.shape == (batch, 1), out.shape
        assert jnp.allclose(out, ref, atol=1e-4, rtol=1e-4), (
            f"batch={batch}: max abs err {jnp.max(jnp.abs(out - ref))}")

    print("KERNEL_OK")
</pallas_src>

<mosaic_0001>
module attributes {stable_mosaic.version = 11 : i64} {
  func.func @dar_kernel(%arg0: i32, %arg1: memref<8x24xf32, #tpu.memory_space<vmem>>, %arg2: memref<24x32xf32, #tpu.memory_space<vmem>>, %arg3: memref<1x32xf32, #tpu.memory_space<vmem>>, %arg4: memref<32x32xf32, #tpu.memory_space<vmem>>, %arg5: memref<1x32xf32, #tpu.memory_space<vmem>>, %arg6: memref<1x32xf32, #tpu.memory_space<vmem>>, %arg7: memref<1xf32, #tpu.memory_space<smem>>, %arg8: memref<8x1xf32, #tpu.memory_space<vmem>>) attributes {dimension_semantics = [#tpu.dimension_semantics<parallel>], iteration_bounds = array<i64: 2>, scalar_prefetch = 0 : i64, scratch_operands = 0 : i64, tpu.core_type = #tpu.core_type<tc>, window_params = [{transform_indices = @transform_0, window_bounds = array<i64: 8, 24>}, {pipeline_mode = #tpu.pipeline_mode<synchronous>, transform_indices = @transform_1, window_bounds = array<i64: 24, 32>}, {pipeline_mode = #tpu.pipeline_mode<synchronous>, transform_indices = @transform_2, window_bounds = array<i64: 1, 32>}, {pipeline_mode = #tpu.pipeline_mode<synchronous>, transform_indices = @transform_3, window_bounds = array<i64: 32, 32>}, {pipeline_mode = #tpu.pipeline_mode<synchronous>, transform_indices = @transform_4, window_bounds = array<i64: 1, 32>}, {pipeline_mode = #tpu.pipeline_mode<synchronous>, transform_indices = @transform_5, window_bounds = array<i64: 1, 32>}, {transform_indices = @transform_6, window_bounds = array<i64: 1>}, {transform_indices = @transform_7, window_bounds = array<i64: 8, 1>}]} {
    %c0 = arith.constant 0 : index
    %c0_0 = arith.constant 0 : index
    %0 = vector.load %arg1[%c0, %c0_0] : memref<8x24xf32, #tpu.memory_space<vmem>>, vector<8x24xf32>
    %c0_1 = arith.constant 0 : index
    %c0_2 = arith.constant 0 : index
    %1 = vector.load %arg2[%c0_1, %c0_2] : memref<24x32xf32, #tpu.memory_space<vmem>>, vector<24x32xf32>
    %cst = arith.constant dense<0.000000e+00> : vector<8x32xf32>
    %2 = tpu.matmul %0, %1, %cst {dimension_numbers = #tpu.dot_dimension_numbers<[1], [0], [0], [1], [0, 0, 1, 1], [], []>} : vector<8x24xf32>, vector<24x32xf32>, vector<8x32xf32> -> vector<8x32xf32>
    %c0_3 = arith.constant 0 : index
    %c0_4 = arith.constant 0 : index
    %3 = vector.load %arg3[%c0_3, %c0_4] : memref<1x32xf32, #tpu.memory_space<vmem>>, vector<1x32xf32>
    %4 = vector.broadcast %3 : vector<1x32xf32> to vector<8x32xf32>
    %5 = arith.addf %2, %4 : vector<8x32xf32>
    %cst_5 = arith.constant 0.000000e+00 : f32
    %6 = vector.broadcast %cst_5 : f32 to vector<8x32xf32>
    %7 = arith.maximumf %5, %6 : vector<8x32xf32>
    %c0_6 = arith.constant 0 : index
    %c0_7 = arith.constant 0 : index
    %8 = vector.load %arg4[%c0_6, %c0_7] : memref<32x32xf32, #tpu.memory_space<vmem>>, vector<32x32xf32>
    %cst_8 = arith.constant dense<0.000000e+00> : vector<8x32xf32>
    %9 = tpu.matmul %7, %8, %cst_8 {dimension_numbers = #tpu.dot_dimension_numbers<[1], [0], [0], [1], [0, 0, 1, 1], [], []>} : vector<8x32xf32>, vector<32x32xf32>, vector<8x32xf32> -> vector<8x32xf32>
    %c0_9 = arith.constant 0 : index
    %c0_10 = arith.constant 0 : index
    %10 = vector.load %arg5[%c0_9, %c0_10] : memref<1x32xf32, #tpu.memory_space<vmem>>, vector<1x32xf32>
    %11 = vector.broadcast %10 : vector<1x32xf32> to vector<8x32xf32>
    %12 = arith.addf %9, %11 : vector<8x32xf32>
    %cst_11 = arith.constant 0.000000e+00 : f32
    %13 = vector.broadcast %cst_11 : f32 to vector<8x32xf32>
    %14 = arith.maximumf %12, %13 : vector<8x32xf32>
    %c0_12 = arith.constant 0 : index
    %c0_13 = arith.constant 0 : index
    %15 = vector.load %arg6[%c0_12, %c0_13] : memref<1x32xf32, #tpu.memory_space<vmem>>, vector<1x32xf32>
    %16 = vector.broadcast %15 : vector<1x32xf32> to vector<8x32xf32>
    %17 = arith.mulf %14, %16 : vector<8x32xf32>
    %cst_14 = arith.constant dense<0.000000e+00> : vector<8xf32>
    %18 = vector.multi_reduction <add>, %17, %cst_14 [1] : vector<8x32xf32> to vector<8xf32>
    %19 = vector.shape_cast %18 : vector<8xf32> to vector<8x1xf32>
    %c0_15 = arith.constant 0 : index
    %20 = memref.load %arg7[%c0_15] : memref<1xf32, #tpu.memory_space<smem>>
    %21 = vector.broadcast %20 : f32 to vector<8x1xf32>
    %22 = arith.addf %19, %21 : vector<8x1xf32>
    %c0_16 = arith.constant 0 : index
    %c0_17 = arith.constant 0 : index
    %23 = vector.load %arg8[%c0_16, %c0_17] : memref<8x1xf32, #tpu.memory_space<vmem>>, vector<8x1xf32>
    tpu.vector_store %arg8[%c0_16, %c0_17], %22 {strides = array<i32>} : memref<8x1xf32, #tpu.memory_space<vmem>>, vector<8x1xf32>,
    return
  }
  func.func @transform_0(%arg0: i32) -> (i32, i32) {
    %c0_i32 = arith.constant 0 : i32
    %c0_i32_0 = arith.constant 0 : i32
    return %arg0, %c0_i32 : i32, i32
  }
  func.func @transform_1(%arg0: i32) -> (i32, i32) {
    %c0_i32 = arith.constant 0 : i32
    %c0_i32_0 = arith.constant 0 : i32
    %c0_i32_1 = arith.constant 0 : i32
    return %c0_i32, %c0_i32_0 : i32, i32
  }
  func.func @transform_2(%arg0: i32) -> (i32, i32) {
    %c0_i32 = arith.constant 0 : i32
    %c0_i32_0 = arith.constant 0 : i32
    %c0_i32_1 = arith.constant 0 : i32
    return %c0_i32, %c0_i32_0 : i32, i32
  }
  func.func @transform_3(%arg0: i32) -> (i32, i32) {
    %c0_i32 = arith.constant 0 : i32
    %c0_i32_0 = arith.constant 0 : i32
    %c0_i32_1 = arith.constant 0 : i32
    return %c0_i32, %c0_i32_0 : i32, i32
  }
  func.func @transform_4(%arg0: i32) -> (i32, i32) {
    %c0_i32 = arith.constant 0 : i32
    %c0_i32_0 = arith.constant 0 : i32
    %c0_i32_1 = arith.constant 0 : i32
    return %c0_i32, %c0_i32_0 : i32, i32
  }
  func.func @transform_5(%arg0: i32) -> (i32, i32) {
    %c0_i32 = arith.constant 0 : i32
    %c0_i32_0 = arith.constant 0 : i32
    %c0_i32_1 = arith.constant 0 : i32
    return %c0_i32, %c0_i32_0 : i32, i32
  }
  func.func @transform_6(%arg0: i32) -> i32 {
    %c0_i32 = arith.constant 0 : i32
    %c0_i32_0 = arith.constant 0 : i32
    return %c0_i32 : i32
  }
  func.func @transform_7(%arg0: i32) -> (i32, i32) {
    %c0_i32 = arith.constant 0 : i32
    %c0_i32_0 = arith.constant 0 : i32
    return %arg0, %c0_i32 : i32, i32
  }
}

</mosaic_0001>

<bundles_post_ra>
// kernel: dar_forward.1
= control target key start
LH: loop header
LB: loop body
LE: loop exit
PB: predicated region body
PF: predicated region fallthrough
CT: control target
= control target key end

     0   :  { %s633_s26 = smov 0   ;;  %s687_s0 = inlined_call_operand.vmem [shape: f32[10,24], index: 0, kind: input, shape index: {}]   ;;  %s688_s1 = inlined_call_operand.vmem [shape: f32[24,32], index: 1, kind: input, shape index: {}]   ;;  %s689_s2 = inlined_call_operand.vmem [shape: f32[1,32], index: 2, kind: input, shape index: {}]   ;;  %s690_s3 = inlined_call_operand.vmem [shape: f32[32,32], index: 3, kind: input, shape index: {}]   ;;  %s691_s4 = inlined_call_operand.vmem [shape: f32[1,32], index: 4, kind: input, shape index: {}]   ;;  %s692_s5 = inlined_call_operand.vmem [shape: f32[1,32], index: 5, kind: input, shape index: {}]   ;;  %s693_s6 = inlined_call_operand.<no memory space> [shape: f32[1], index: 6, kind: input, shape index: {}]   ;;  %s694_s7 = inlined_call_operand.vmem [shape: f32[10,1], index: 7, kind: output, shape index: {}]  }
   0x1   :  { %12 = sst [smem:[#allocation2]] %s693_s6 }
   0x2 LB: > { %s516_s27 = sadd.s32 4294967295, %s585_s26   ;;  %p520_p0 = scmp.ge.s32.totalorder %s585_s26, 1  ;;  %s585_s26 = sphi %s633_s26, %s18_s26  }
   0x3   : > { %p237_p1 = scmp.lt.s32.totalorder %s585_s26, 3 }
   0x5   : > { %p238_p2 = pnand %p520_p0, %p237_p1 }
   0x6   : > { %v276_v0 = vld [vmem:[%s688_s1] sm:$0xff] (!%p238_p2)  ;;  %v277_v1 = vld [vmem:[%s688_s1 + $0x8] sm:$0xff] (!%p238_p2)  ;;  %v587_v2 = vmov (!%p238_p2), 0.0|0.0   ;;  %vm588_vm0 = vmmov (!%p238_p2), 0   ;;  %v589_v4 = vmov (!%p238_p2), 0.0   ;;  %p267_p3 = scmp.lt.s32.totalorder (!%p238_p2), %s516_s27, 1 }
   0x7   : > { %241 = sbr.rel (%p238_p2) target bundleno = 598 (0x256), region = 48  ;;  %559 = vmatprep.subr.bf16.mxu0 (!%p238_p2), %v587_v2  ;;  %v560_v3 = vpack.c.bf16 (!%p238_p2), %v277_v1, %v276_v0  ;;  %545 = vmatprep.mubr.msk.f32.mxu0 (!%p238_p2), %vm588_vm0, %v589_v4  ;;  %v361_v5 = vld [vmem:[%s690_s3] sm:$0xff] (!%p238_p2)  ;;  %v362_v6 = vld [vmem:[%s690_s3 + $0x8] sm:$0xff] (!%p238_p2)  ;;  %v278_v8 = vld [vmem:[%s688_s1 + $0x10] sm:$0xff] (!%p238_p2)  ;;  %vm286_vm1 = vcmask (!%p238_p2), 195584   ;;  %vm372_vm2 = vcmask (!%p238_p2), 261120  }
   0x8   : > { %562 = vmatprep.subr.bf16.mxu1 (!%p238_p2), %v587_v2  ;;  %v563_v7 = vpack.c.bf16 (!%p238_p2), %v362_v6, %v361_v5  ;;  %556 = vmatprep.mubr.msk.f32.mxu1 (!%p238_p2), %vm588_vm0, %v589_v4  ;;  %v363_v10 = vld [vmem:[%s690_s3 + $0x10] sm:$0xff] (!%p238_p2)  ;;  %v364_v11 = vld [vmem:[%s690_s3 + $0x18] sm:$0xff] (!%p238_p2)  ;;  %v523_v13 = vld [vmem:[%s689_s2] ss:$0 sm:$0xff] (!%p238_p2)  ;;  %s458_s6 = sld [smem:[#allocation2]] (!%p238_p2)  ;;  %vm461_vm3 = vcmask (!%p238_p2), 7168  }
   0x9   : > { %561 = vmatpush3.bf16.msra.mxu0 (!%p238_p2), %v560_v3  ;;  %v566_v12 = vpack.c.bf16 (!%p238_p2), %v364_v11, %v363_v10  ;;  %v525_v18 = vld [vmem:[%s691_s4] ss:$0 sm:$0xff] (!%p238_p2) }
   0xa   : > { %543 = vmatprep.subr.mxu0 (!%p238_p2), %v589_v4  ;;  %564 = vmatpush3.bf16.msra.mxu1 (!%p238_p2), %v563_v7  ;;  %v527_v22 = vld [vmem:[%s692_s5] ss:$0 sm:$0xff] (!%p238_p2) }
   0xb   : > { %565 = vmatprep.subr.bf16.mxu1 (!%p238_p2), %v587_v2 }
   0xd   : > { %544 = vmatpush3.msra.mxu0 (!%p238_p2), %v278_v8 }
   0xe   : > { %s696_s27 = smov (!%p267_p3, %s516_s27), 1  ;;  %567 = vmatpush3.bf16.msra.mxu1 %v566_v12  ;;  %v459_v26 = vstv %s458_s6 }
   0xf   : > { %s521_s14 = sshll.u32 %s696_s27, 3 }
  0x10   : > { %s270_s17 = scalar_lea.vmem %s687_s0, %s521_s14  ;;  %s274_s9 = scalar_lea.vmem %s694_s7, %s521_s14 }
  0x11   : > { %v275_v9 = vld [vmem:[%s270_s17] sm:$0xff] }
  0x12   : > { %546 = vmatmul.mubr.msk.f32.vlgmr.msra.gmra.mrb[0].mxu0 %vm286_vm1, %v275_v9 }
  0xe5   : > { %v356_v14 = vpop.f32.mrb[0].mxu0 }
  0xe6   : > { %v357_v15 = vadd.f32 %v523_v13, %v356_v14  ;;  %v547_v16 = vpop.f32.mrb[1].mxu0 }
  0xe8   : > { %v360_v17 = vmax.f32 %v357_v15, 0.0 }
  0xea   : > { %557 = vmatmul.mubr.msk.f32.vlgmr.msra.gmra.mrb[0].mxu1 %vm372_vm2, %v360_v17 }
 0x1bd   : > { %v442_v19 = vpop.f32.mrb[0].mxu1 }
 0x1be   : > { %v443_v20 = vadd.f32 %v525_v18, %v442_v19  ;;  %v558_v21 = vpop.f32.mrb[1].mxu1 }
 0x1c0   : > { %v446_v23 = vmax.f32 %v443_v20, 0.0 }
 0x1c2   : > { %v454_v24 = vmul.f32 %v527_v22, %v446_v23 }
 0x1c4   : > { %v455_v25 = vsel %vm372_vm2, %v454_v24, 0.0 }
 0x1c5   : > { %456 = vadd.xlane.f32.xlu0 %v455_v25 }
 0x252   : > { %v457_v27 = vpop.xlane.xlu0 %456 }
 0x253   : > { %v460_v28 = vadd.f32 %v459_v26, %v457_v27 }
 0x255   : > { %462 = vst.msk [vmem:[%s274_s9] sm:$0xff] %vm461_vm3, %v460_v28 }
 0x256 PF: > { %s18_s26 = sadd.s32 1, %s585_s26  }
 0x257   : > { %p15_p4 = scmp.ge.s32.totalorder %s18_s26, 4  }
 0x259   :  { %17 = sbr.rel (!%p15_p4) target bundleno = 2 (0x2), region = 78 }

</bundles_post_ra>
